<compile_context>
chip_gen: v7x
topology: tpu7x:2x2x1
jax: 0.10.0
libtpu: 0.0.40
codegen_flags: <defaults>
</compile_context>

<pallas_src>
import functools

import jax
import jax.numpy as jnp
from jax.experimental import pallas as pl
from jax.experimental.pallas import tpu as pltpu


def _plddt_kernel(x_ref, w1_ref, b1_ref, w2_ref, b2_ref, w3_ref, b3_ref, o_ref):
    # LayerNorm over the feature axis, PyTorch semantics: biased variance, eps=1e-5.
    # Affine (gamma/beta) has been folded into w1/b1 by the wrapper.
    x = x_ref[...].astype(jnp.float32)
    mean = jnp.mean(x, axis=-1, keepdims=True)
    centered = x - mean
    var = jnp.mean(centered * centered, axis=-1, keepdims=True)
    xn = centered * jax.lax.rsqrt(var + 1e-5)

    # lin1 + ReLU (LHS/RHS in weight dtype -> MXU bf16 path; f32 accumulation).
    h1 = jnp.dot(xn.astype(w1_ref.dtype), w1_ref[...],
                 preferred_element_type=jnp.float32) + b1_ref[...]
    h1 = jnp.maximum(h1, 0.0)

    # lin2 + ReLU
    h2 = jnp.dot(h1.astype(w2_ref.dtype), w2_ref[...],
                 preferred_element_type=jnp.float32) + b2_ref[...]
    h2 = jnp.maximum(h2, 0.0)

    # lin3 (no activation); output feature dim is padded to a multiple of 128 -> lane-dense store.
    out = jnp.dot(h2.astype(w3_ref.dtype), w3_ref[...],
                  preferred_element_type=jnp.float32) + b3_ref[...]
    o_ref[...] = out.astype(o_ref.dtype)


def _round_up(x, m):
    return (x + m - 1) // m * m


@functools.partial(jax.jit, static_argnames=("row_tile", "use_bf16"))
def predicted_lddt(node_feat, params, *, row_tile=1024, use_bf16=True):
    """node_feat: [..., D_in] float32  ->  logits [..., num_bins] float32."""
    d_in = node_feat.shape[-1]
    lead_shape = node_feat.shape[:-1]
    x2d = node_feat.reshape(-1, d_in).astype(jnp.float32)
    n_rows = x2d.shape[0]

    # Effective row tile: large to fill the MXU M dimension, clipped for small inputs.
    row_tile_eff = min(row_tile, _round_up(n_rows, 8))
    n_rows_pad = _round_up(n_rows, row_tile_eff)
    if n_rows_pad != n_rows:
        x2d = jnp.pad(x2d, ((0, n_rows_pad - n_rows), (0, 0)))

    gamma = params["ln_gamma"].astype(jnp.float32)
    beta = params["ln_beta"].astype(jnp.float32)
    w1 = params["w1"].astype(jnp.float32)
    b1 = params["b1"].astype(jnp.float32)
    w2 = params["w2"].astype(jnp.float32)
    b2 = params["b2"].astype(jnp.float32)
    w3 = params["w3"].astype(jnp.float32)
    b3 = params["b3"].astype(jnp.float32)

    hidden = w1.shape[1]
    num_bins = w3.shape[1]

    # Fold the LayerNorm affine into lin1 (exact algebraic identity).
    w1_eff = gamma[:, None] * w1
    b1_eff = beta @ w1 + b1

    # Pad the output feature dim up to a multiple of 128 (lane-dense stores / full-width MXU N).
    nb_pad = _round_up(num_bins, 128)
    if nb_pad != num_bins:
        w3 = jnp.pad(w3, ((0, 0), (0, nb_pad - num_bins)))
        b3 = jnp.pad(b3, ((0, nb_pad - num_bins),))

    # bf16 MXU operands (weights here; activations cast inside the kernel), f32 accumulation.
    mm_dtype = jnp.bfloat16 if use_bf16 else jnp.float32
    w1_eff = w1_eff.astype(mm_dtype)
    w2 = w2.astype(mm_dtype)
    w3 = w3.astype(mm_dtype)

    b1_eff = b1_eff.reshape(1, hidden)
    b2 = b2.reshape(1, hidden)
    b3 = b3.reshape(1, nb_pad)

    grid = (n_rows_pad // row_tile_eff,)
    full = lambda shape: pl.BlockSpec(shape, lambda i: (0, 0))  # constant block -> no re-DMA per step

    out = pl.pallas_call(
        _plddt_kernel,
        out_shape=jax.ShapeDtypeStruct((n_rows_pad, nb_pad), jnp.float32),
        grid_spec=pltpu.PrefetchScalarGridSpec(
            num_scalar_prefetch=0,
            grid=grid,
            in_specs=[
                pl.BlockSpec((row_tile_eff, d_in), lambda i: (i, 0)),   # x rows
                full((d_in, hidden)),                                   # w1 (LN affine folded in)
                full((1, hidden)),                                      # b1
                full((hidden, hidden)),                                 # w2
                full((1, hidden)),                                      # b2
                full((hidden, nb_pad)),                                 # w3 (padded cols)
                full((1, nb_pad)),                                      # b3 (padded)
            ],
            out_specs=pl.BlockSpec((row_tile_eff, nb_pad), lambda i: (i, 0)),
        ),
        compiler_params=pltpu.CompilerParams(
            dimension_semantics=("parallel",),
            vmem_limit_bytes=48 * 1024 * 1024),
    )(x2d, w1_eff, b1_eff, w2, b2, w3, b3)

    out = out[:n_rows, :num_bins]
    return out.reshape(*lead_shape, num_bins)


def init_params(key, node_dim_in, node_dim_hidden=128, num_bins=50):
    """Deterministic synthetic parameters matching nn.LayerNorm / nn.Linear shapes.

    Linear weights are stored pre-transposed as [in, out] (PyTorch stores [out, in]);
    math is identical: y = x @ W + b. gamma/beta are perturbed from (1, 0) so the
    LN-affine folding is actually exercised by the correctness check.
    """
    ks = jax.random.split(key, 8)
    scale1 = 1.0 / jnp.sqrt(node_dim_in)
    scale2 = 1.0 / jnp.sqrt(node_dim_hidden)
    return {
        "ln_gamma": 1.0 + 0.1 * jax.random.normal(ks[6], (node_dim_in,), jnp.float32),
        "ln_beta": 0.1 * jax.random.normal(ks[7], (node_dim_in,), jnp.float32),
        "w1": jax.random.uniform(ks[0], (node_dim_in, node_dim_hidden),
                                 jnp.float32, -scale1, scale1),
        "b1": jax.random.uniform(ks[1], (node_dim_hidden,), jnp.float32, -scale1, scale1),
        "w2": jax.random.uniform(ks[2], (node_dim_hidden, node_dim_hidden),
                                 jnp.float32, -scale2, scale2),
        "b2": jax.random.uniform(ks[3], (node_dim_hidden,), jnp.float32, -scale2, scale2),
        "w3": jax.random.uniform(ks[4], (node_dim_hidden, num_bins),
                                 jnp.float32, -scale2, scale2),
        "b3": jax.random.uniform(ks[5], (num_bins,), jnp.float32, -scale2, scale2),
    }


def _reference(node_feat, params):
    """Pure-JAX reference mirroring the PyTorch forward, for verification."""
    g, b = params["ln_gamma"], params["ln_beta"]
    mean = jnp.mean(node_feat, axis=-1, keepdims=True)
    var = jnp.mean((node_feat - mean) ** 2, axis=-1, keepdims=True)
    x = (node_feat - mean) / jnp.sqrt(var + 1e-5) * g + b
    x = jax.nn.relu(x @ params["w1"] + params["b1"])
    x = jax.nn.relu(x @ params["w2"] + params["b2"])
    return x @ params["w3"] + params["b3"]


if __name__ == "__main__":
    key = jax.random.PRNGKey(0)
    k_x, k_p = jax.random.split(key)

    B, L, D_IN = 2, 8, 32        # batch=2, seq=8, node_dim_in=32
    HIDDEN, NUM_BINS = 128, 50

    node_feat = jax.random.normal(k_x, (B, L, D_IN), jnp.float32)
    params = init_params(k_p, D_IN, HIDDEN, NUM_BINS)

    ref = _reference(node_feat, params)

    # f32 MXU path: tight check of the structural changes (fold, padding, tiling).
    out_f32 = jax.block_until_ready(predicted_lddt(node_feat, params, use_bf16=False))
    assert out_f32.shape == (B, L, NUM_BINS), out_f32.shape
    assert jnp.allclose(out_f32, ref, atol=1e-4, rtol=1e-4), \
        float(jnp.max(jnp.abs(out_f32 - ref)))

    # bf16 MXU path (default / fast): looser tolerance against the f32 reference.
    out_bf16 = jax.block_until_ready(predicted_lddt(node_feat, params, use_bf16=True))
    assert out_bf16.shape == (B, L, NUM_BINS), out_bf16.shape
    assert jnp.allclose(out_bf16, ref, atol=2e-2, rtol=2e-2), \
        float(jnp.max(jnp.abs(out_bf16 - ref)))

    print("KERNEL_OK")
</pallas_src>

<mosaic_0001>
module attributes {stable_mosaic.version = 11 : i64} {
  func.func @_plddt_kernel(%arg0: i32, %arg1: memref<16x32xf32, #tpu.memory_space<vmem>>, %arg2: memref<32x128xf32, #tpu.memory_space<vmem>>, %arg3: memref<1x128xf32, #tpu.memory_space<vmem>>, %arg4: memref<128x128xf32, #tpu.memory_space<vmem>>, %arg5: memref<1x128xf32, #tpu.memory_space<vmem>>, %arg6: memref<128x128xf32, #tpu.memory_space<vmem>>, %arg7: memref<1x128xf32, #tpu.memory_space<vmem>>, %arg8: memref<16x128xf32, #tpu.memory_space<vmem>>) attributes {dimension_semantics = [#tpu.dimension_semantics<parallel>], iteration_bounds = array<i64: 1>, scalar_prefetch = 0 : i64, scratch_operands = 0 : i64, tpu.core_type = #tpu.core_type<tc>, window_params = [{transform_indices = @transform_0, window_bounds = array<i64: 16, 32>}, {pipeline_mode = #tpu.pipeline_mode<synchronous>, transform_indices = @transform_1, window_bounds = array<i64: 32, 128>}, {pipeline_mode = #tpu.pipeline_mode<synchronous>, transform_indices = @transform_2, window_bounds = array<i64: 1, 128>}, {pipeline_mode = #tpu.pipeline_mode<synchronous>, transform_indices = @transform_3, window_bounds = array<i64: 128, 128>}, {pipeline_mode = #tpu.pipeline_mode<synchronous>, transform_indices = @transform_4, window_bounds = array<i64: 1, 128>}, {pipeline_mode = #tpu.pipeline_mode<synchronous>, transform_indices = @transform_5, window_bounds = array<i64: 128, 128>}, {pipeline_mode = #tpu.pipeline_mode<synchronous>, transform_indices = @transform_6, window_bounds = array<i64: 1, 128>}, {transform_indices = @transform_7, window_bounds = array<i64: 16, 128>}]} {
    %c0 = arith.constant 0 : index
    %c0_0 = arith.constant 0 : index
    %0 = vector.load %arg1[%c0, %c0_0] : memref<16x32xf32, #tpu.memory_space<vmem>>, vector<16x32xf32>
    %cst = arith.constant dense<0.000000e+00> : vector<16xf32>
    %1 = vector.multi_reduction <add>, %0, %cst [1] : vector<16x32xf32> to vector<16xf32>
    %2 = vector.shape_cast %1 : vector<16xf32> to vector<16x1xf32>
    %cst_1 = arith.constant 3.200000e+01 : f32
    %3 = vector.broadcast %cst_1 : f32 to vector<16x1xf32>
    %4 = arith.divf %2, %3 : vector<16x1xf32>
    %5 = vector.broadcast %4 : vector<16x1xf32> to vector<16x32xf32>
    %6 = arith.subf %0, %5 : vector<16x32xf32>
    %7 = arith.mulf %6, %6 : vector<16x32xf32>
    %cst_2 = arith.constant dense<0.000000e+00> : vector<16xf32>
    %8 = vector.multi_reduction <add>, %7, %cst_2 [1] : vector<16x32xf32> to vector<16xf32>
    %9 = vector.shape_cast %8 : vector<16xf32> to vector<16x1xf32>
    %cst_3 = arith.constant 3.200000e+01 : f32
    %10 = vector.broadcast %cst_3 : f32 to vector<16x1xf32>
    %11 = arith.divf %9, %10 : vector<16x1xf32>
    %cst_4 = arith.constant 9.99999974E-6 : f32
    %12 = vector.broadcast %cst_4 : f32 to vector<16x1xf32>
    %13 = arith.addf %11, %12 : vector<16x1xf32>
    %14 = math.rsqrt %13 : vector<16x1xf32>
    %15 = vector.broadcast %14 : vector<16x1xf32> to vector<16x32xf32>
    %16 = arith.mulf %6, %15 : vector<16x32xf32>
    %c0_5 = arith.constant 0 : index
    %c0_6 = arith.constant 0 : index
    %17 = vector.load %arg2[%c0_5, %c0_6] : memref<32x128xf32, #tpu.memory_space<vmem>>, vector<32x128xf32>
    %cst_7 = arith.constant dense<0.000000e+00> : vector<16x128xf32>
    %18 = tpu.matmul %16, %17, %cst_7 {dimension_numbers = #tpu.dot_dimension_numbers<[1], [0], [0], [1], [0, 0, 1, 1], [], []>} : vector<16x32xf32>, vector<32x128xf32>, vector<16x128xf32> -> vector<16x128xf32>
    %c0_8 = arith.constant 0 : index
    %c0_9 = arith.constant 0 : index
    %19 = vector.load %arg3[%c0_8, %c0_9] : memref<1x128xf32, #tpu.memory_space<vmem>>, vector<1x128xf32>
    %20 = vector.broadcast %19 : vector<1x128xf32> to vector<16x128xf32>
    %21 = arith.addf %18, %20 : vector<16x128xf32>
    %cst_10 = arith.constant 0.000000e+00 : f32
    %22 = vector.broadcast %cst_10 : f32 to vector<16x128xf32>
    %23 = arith.maximumf %21, %22 : vector<16x128xf32>
    %c0_11 = arith.constant 0 : index
    %c0_12 = arith.constant 0 : index
    %24 = vector.load %arg4[%c0_11, %c0_12] : memref<128x128xf32, #tpu.memory_space<vmem>>, vector<128x128xf32>
    %cst_13 = arith.constant dense<0.000000e+00> : vector<16x128xf32>
    %25 = tpu.matmul %23, %24, %cst_13 {dimension_numbers = #tpu.dot_dimension_numbers<[1], [0], [0], [1], [0, 0, 1, 1], [], []>} : vector<16x128xf32>, vector<128x128xf32>, vector<16x128xf32> -> vector<16x128xf32>
    %c0_14 = arith.constant 0 : index
    %c0_15 = arith.constant 0 : index
    %26 = vector.load %arg5[%c0_14, %c0_15] : memref<1x128xf32, #tpu.memory_space<vmem>>, vector<1x128xf32>
    %27 = vector.broadcast %26 : vector<1x128xf32> to vector<16x128xf32>
    %28 = arith.addf %25, %27 : vector<16x128xf32>
    %cst_16 = arith.constant 0.000000e+00 : f32
    %29 = vector.broadcast %cst_16 : f32 to vector<16x128xf32>
    %30 = arith.maximumf %28, %29 : vector<16x128xf32>
    %c0_17 = arith.constant 0 : index
    %c0_18 = arith.constant 0 : index
    %31 = vector.load %arg6[%c0_17, %c0_18] : memref<128x128xf32, #tpu.memory_space<vmem>>, vector<128x128xf32>
    %cst_19 = arith.constant dense<0.000000e+00> : vector<16x128xf32>
    %32 = tpu.matmul %30, %31, %cst_19 {dimension_numbers = #tpu.dot_dimension_numbers<[1], [0], [0], [1], [0, 0, 1, 1], [], []>} : vector<16x128xf32>, vector<128x128xf32>, vector<16x128xf32> -> vector<16x128xf32>
    %c0_20 = arith.constant 0 : index
    %c0_21 = arith.constant 0 : index
    %33 = vector.load %arg7[%c0_20, %c0_21] : memref<1x128xf32, #tpu.memory_space<vmem>>, vector<1x128xf32>
    %34 = vector.broadcast %33 : vector<1x128xf32> to vector<16x128xf32>
    %35 = arith.addf %32, %34 : vector<16x128xf32>
    %c0_22 = arith.constant 0 : index
    %c0_23 = arith.constant 0 : index
    %36 = vector.load %arg8[%c0_22, %c0_23] : memref<16x128xf32, #tpu.memory_space<vmem>>, vector<16x128xf32>
    tpu.vector_store %arg8[%c0_22, %c0_23], %35 {strides = array<i32>} : memref<16x128xf32, #tpu.memory_space<vmem>>, vector<16x128xf32>,
    return
  }
  func.func @transform_0(%arg0: i32) -> (i32, i32) {
    %c0_i32 = arith.constant 0 : i32
    %c0_i32_0 = arith.constant 0 : i32
    return %arg0, %c0_i32 : i32, i32
  }
  func.func @transform_1(%arg0: i32) -> (i32, i32) {
    %c0_i32 = arith.constant 0 : i32
    %c0_i32_0 = arith.constant 0 : i32
    %c0_i32_1 = arith.constant 0 : i32
    return %c0_i32, %c0_i32_0 : i32, i32
  }
  func.func @transform_2(%arg0: i32) -> (i32, i32) {
    %c0_i32 = arith.constant 0 : i32
    %c0_i32_0 = arith.constant 0 : i32
    %c0_i32_1 = arith.constant 0 : i32
    return %c0_i32, %c0_i32_0 : i32, i32
  }
  func.func @transform_3(%arg0: i32) -> (i32, i32) {
    %c0_i32 = arith.constant 0 : i32
    %c0_i32_0 = arith.constant 0 : i32
    %c0_i32_1 = arith.constant 0 : i32
    return %c0_i32, %c0_i32_0 : i32, i32
  }
  func.func @transform_4(%arg0: i32) -> (i32, i32) {
    %c0_i32 = arith.constant 0 : i32
    %c0_i32_0 = arith.constant 0 : i32
    %c0_i32_1 = arith.constant 0 : i32
    return %c0_i32, %c0_i32_0 : i32, i32
  }
  func.func @transform_5(%arg0: i32) -> (i32, i32) {
    %c0_i32 = arith.constant 0 : i32
    %c0_i32_0 = arith.constant 0 : i32
    %c0_i32_1 = arith.constant 0 : i32
    return %c0_i32, %c0_i32_0 : i32, i32
  }
  func.func @transform_6(%arg0: i32) -> (i32, i32) {
    %c0_i32 = arith.constant 0 : i32
    %c0_i32_0 = arith.constant 0 : i32
    %c0_i32_1 = arith.constant 0 : i32
    return %c0_i32, %c0_i32_0 : i32, i32
  }
  func.func @transform_7(%arg0: i32) -> (i32, i32) {
    %c0_i32 = arith.constant 0 : i32
    %c0_i32_0 = arith.constant 0 : i32
    return %arg0, %c0_i32 : i32, i32
  }
}

</mosaic_0001>

<bundles_post_ra>
// kernel: predicted_lddt.1
= control target key start
LH: loop header
LB: loop body
LE: loop exit
PB: predicated region body
PF: predicated region fallthrough
CT: control target
= control target key end

     0   :  { %vm28_vm0 = vcmask 261120   ;;  %s743_s0 = inlined_call_operand.vmem [shape: f32[16,32], index: 0, kind: input, shape index: {}]   ;;  %s744_s1 = inlined_call_operand.vmem [shape: f32[32,128], index: 1, kind: input, shape index: {}]   ;;  %s745_s3 = inlined_call_operand.vmem [shape: f32[128,128], index: 3, kind: input, shape index: {}]   ;;  %s746_s5 = inlined_call_operand.vmem [shape: f32[128,128], index: 5, kind: input, shape index: {}]   ;;  %s747_s2 = inlined_call_operand.vmem [shape: f32[1,128], index: 2, kind: input, shape index: {}]   ;;  %s748_s4 = inlined_call_operand.vmem [shape: f32[1,128], index: 4, kind: input, shape index: {}]   ;;  %s749_s6 = inlined_call_operand.vmem [shape: f32[1,128], index: 6, kind: input, shape index: {}]   ;;  %s750_s7 = inlined_call_operand.vmem [shape: f32[16,128], index: 7, kind: output, shape index: {}]  }
   0x1   :  { %v26_v0 = vld [vmem:[%s743_s0] sm:$0xff]  ;;  %v27_v1 = vld [vmem:[%s743_s0 + $0x8] sm:$0xff]  ;;  %v58_v16 = vld [vmem:[%s744_s1 + $0x10] sm:$0xff] }
   0x2   :  { %v29_v2 = vsel %vm28_vm0, %v26_v0, 0.0  ;;  %v32_v3 = vsel %vm28_vm0, %v27_v1, 0.0  ;;  %v56_v14 = vld [vmem:[%s744_s1] sm:$0xff]  ;;  %v57_v15 = vld [vmem:[%s744_s1 + $0x8] sm:$0xff]  ;;  %v59_v18 = vld [vmem:[%s744_s1 + $0x18] sm:$0xff] }
   0x3   :  { %30 = vadd.xlane.f32.xlu0 %v29_v2  ;;  %v482_v17 = vpack.c.bf16 %v57_v15, %v56_v14  ;;  %v486_v19 = vpack.c.bf16 %v59_v18, %v58_v16  ;;  %v150_v20 = vld [vmem:[%s745_s3] sm:$0xff]  ;;  %v151_v21 = vld [vmem:[%s745_s3 + $0x8] sm:$0xff]  ;;  %v152_v22 = vld [vmem:[%s745_s3 + $0x10] sm:$0xff] }
   0x4   :  { %v490_v23 = vpack.c.bf16 %v151_v21, %v150_v20  ;;  %v153_v24 = vld [vmem:[%s745_s3 + $0x18] sm:$0xff]  ;;  %v154_v26 = vld [vmem:[%s745_s3 + $0x20] sm:$0xff]  ;;  %v155_v27 = vld [vmem:[%s745_s3 + $0x28] sm:$0xff] }
   0x5   :  { %483 = vmatprep.subr.bf16.mxu0 %v482_v17  ;;  %v494_v25 = vpack.c.bf16 %v153_v24, %v152_v22  ;;  %v498_v28 = vpack.c.bf16 %v155_v27, %v154_v26  ;;  %v156_v29 = vld [vmem:[%s745_s3 + $0x30] sm:$0xff]  ;;  %v157_v30 = vld [vmem:[%s745_s3 + $0x38] sm:$0xff]  ;;  %v158_v32 = vld [vmem:[%s745_s3 + $0x40] sm:$0xff] }
   0x6   :  { %485 = vmatpush3.bf16.msra.mxu0 %v482_v17  ;;  %491 = vmatprep.subr.bf16.mxu1 %v490_v23  ;;  %v502_v31 = vpack.c.bf16 %v157_v30, %v156_v29  ;;  %v159_v33 = vld [vmem:[%s745_s3 + $0x48] sm:$0xff]  ;;  %v160_v35 = vld [vmem:[%s745_s3 + $0x50] sm:$0xff]  ;;  %v161_v36 = vld [vmem:[%s745_s3 + $0x58] sm:$0xff] }
   0x7   :  { %33 = vadd.xlane.f32.xlu0 %v32_v3  ;;  %487 = vmatprep.subr.bf16.mxu0 %v486_v19  ;;  %v506_v34 = vpack.c.bf16 %v159_v33, %v158_v32  ;;  %v510_v37 = vpack.c.bf16 %v161_v36, %v160_v35  ;;  %v162_v38 = vld [vmem:[%s745_s3 + $0x60] sm:$0xff]  ;;  %v163_v39 = vld [vmem:[%s745_s3 + $0x68] sm:$0xff]  ;;  %v164_v51 = vld [vmem:[%s745_s3 + $0x70] sm:$0xff] }
   0x8   :  { %493 = vmatpush3.bf16.msra.mxu1 %v490_v23  ;;  %v514_v40 = vpack.c.bf16 %v163_v39, %v162_v38  ;;  %v165_v52 = vld [vmem:[%s745_s3 + $0x78] sm:$0xff]  ;;  %v250_v54 = vld [vmem:[%s746_s5] sm:$0xff]  ;;  %v251_v55 = vld [vmem:[%s746_s5 + $0x8] sm:$0xff] }
   0x9   :  { %495 = vmatprep.subr.bf16.mxu1 %v494_v25  ;;  %v518_v53 = vpack.c.bf16 %v165_v52, %v164_v51  ;;  %v252_v56 = vld [vmem:[%s746_s5 + $0x10] sm:$0xff]  ;;  %v522_v57 = vpack.c.bf16 %v251_v55, %v250_v54  ;;  %v253_v58 = vld [vmem:[%s746_s5 + $0x18] sm:$0xff]  ;;  %v254_v60 = vld [vmem:[%s746_s5 + $0x20] sm:$0xff] }
   0xa   :  { %489 = vmatpush3.bf16.msra.mxu0 %v486_v19  ;;  %v526_v59 = vpack.c.bf16 %v253_v58, %v252_v56  ;;  %v255_v61 = vld [vmem:[%s746_s5 + $0x28] sm:$0xff]  ;;  %v256_v63 = vld [vmem:[%s746_s5 + $0x30] sm:$0xff]  ;;  %v258_v2 = vld [vmem:[%s746_s5 + $0x40] sm:$0xff] }
   0xb   :  { %523 = vmatprep.subr.bf16.mxu0 %v522_v57  ;;  %v530_v62 = vpack.c.bf16 %v255_v61, %v254_v60  ;;  %v259_v3 = vld [vmem:[%s746_s5 + $0x48] sm:$0xff]  ;;  %v264_v18 = vld [vmem:[%s746_s5 + $0x70] sm:$0xff]  ;;  %v265_v19 = vld [vmem:[%s746_s5 + $0x78] sm:$0xff] }
   0xc   :  { %497 = vmatpush3.bf16.msra.mxu1 %v494_v25  ;;  %v550_v20 = vpack.c.bf16 %v265_v19, %v264_v18  ;;  %v357_v21 = vld [vmem:[%s748_s4] ss:$0 sm:$0xff] }
   0xd   :  { %499 = vmatprep.subr.bf16.mxu1 %v498_v28 }
  0x10   :  { %501 = vmatpush3.bf16.msra.mxu1 %v498_v28  ;;  %v358_v28 = vld [vmem:[%s749_s6] ss:$0 sm:$0xff] }
  0x11   :  { %503 = vmatprep.subr.bf16.mxu1 %v502_v31 }
  0x14   :  { %505 = vmatpush3.bf16.msra.mxu1 %v502_v31 }
  0x15   :  { %507 = vmatprep.subr.bf16.mxu1 %v506_v34 }
  0x18   :  { %509 = vmatpush3.bf16.msra.mxu1 %v506_v34 }
  0x19   :  { %511 = vmatprep.subr.bf16.mxu1 %v510_v37 }
  0x1c   :  { %513 = vmatpush3.bf16.msra.mxu1 %v510_v37 }
  0x1d   :  { %515 = vmatprep.subr.bf16.mxu1 %v514_v40 }
  0x20   :  { %517 = vmatpush3.bf16.msra.mxu1 %v514_v40 }
  0x21   :  { %519 = vmatprep.subr.bf16.mxu1 %v518_v53 }
  0x24   :  { %521 = vmatpush3.bf16.msra.mxu1 %v518_v53 }
  0x90   :  { %v31_v4 = vpop.xlane.xlu0 %30 }
  0x91   :  { %v36_v5 = vmul.f32 0.03125, %v31_v4  ;;  %v538_v4 = vpack.c.bf16 %v259_v3, %v258_v2 }
  0x93   :  { %v606_v6 = vsub.f32 %v26_v0, %v36_v5  ;;  %v257_v0 = vld [vmem:[%s746_s5 + $0x38] sm:$0xff]  ;;  %v260_v5 = vld [vmem:[%s746_s5 + $0x50] sm:$0xff] }
  0x94   :  { %v34_v7 = vpop.xlane.xlu0 %33 }
  0x95   :  { %v37_v8 = vmul.f32 0.03125, %v34_v7  ;;  %v40_v9 = vmul.f32 %v606_v6, %v606_v6 }
  0x97   :  { %v610_v10 = vsub.f32 %v27_v1, %v37_v8  ;;  %v42_v11 = vsel %vm28_vm0, %v40_v9, 0.0  ;;  %v534_v1 = vpack.c.bf16 %v257_v0, %v256_v63  ;;  %v262_v8 = vld [vmem:[%s746_s5 + $0x60] sm:$0xff]  ;;  %v263_v9 = vld [vmem:[%s746_s5 + $0x68] sm:$0xff] }
  0x98   :  { %43 = vadd.xlane.f32.xlu1 %v42_v11  ;;  %v354_v11 = vld [vmem:[%s747_s2] ss:$0 sm:$0xff] }
  0x99   :  { %v41_v12 = vmul.f32 %v610_v10, %v610_v10 }
  0x9b   :  { %v45_v13 = vsel %vm28_vm0, %v41_v12, 0.0 }
  0x9c   :  { %46 = vadd.xlane.f32.xlu1 %v45_v13 }
 0x125   :  { %v44_v41 = vpop.xlane.xlu1 %43 }
 0x126   :  { %v48_v42 = vmul.f32 0.03125, %v44_v41 }
 0x128   :  { %v50_v43 = vadd.f32 1e-05, %v48_v42 }
 0x129   :  { %v47_v44 = vpop.xlane.xlu1 %46 }
 0x12a   :  { %554 = vrsqrt.f32 %v50_v43  ;;  %v49_v45 = vmul.f32 0.03125, %v47_v44 }
 0x12c   :  { %v51_v46 = vadd.f32 1e-05, %v49_v45 }
 0x12e   :  { %556 = vrsqrt.f32 %v51_v46 }
 0x134   :  { %v555_v47 = vpop.eup %554 }
 0x135   :  { %v54_v48 = vmul.f32 %v555_v47, %v606_v6  ;;  %v261_v6 = vld [vmem:[%s746_s5 + $0x58] sm:$0xff] }
 0x136   :  { %v542_v7 = vpack.c.bf16 %v261_v6, %v260_v5 }
 0x137   :  { %409 = vmatprep.mubr.msk.f32.mxu0 %vm28_vm0, %v54_v48 }
 0x138   :  { %v557_v49 = vpop.eup %556 }
 0x139   :  { %v55_v50 = vmul.f32 %v557_v49, %v610_v10  ;;  %v546_v10 = vpack.c.bf16 %v263_v9, %v262_v8 }
 0x13b   :  { %410 = vmatmul.mubr.msk.f32.vlgmr.msra.gmra.mrb[0].mxu0 %vm28_vm0, %v55_v50 }
 0x13c   :  { %525 = vmatpush3.bf16.msra.mxu0 %v522_v57 }
 0x13d   :  { %527 = vmatprep.subr.bf16.mxu0 %v526_v59 }
 0x140   :  { %529 = vmatpush3.bf16.msra.mxu0 %v526_v59 }
 0x141   :  { %531 = vmatprep.subr.bf16.mxu0 %v530_v62 }
 0x144   :  { %533 = vmatpush3.bf16.msra.mxu0 %v530_v62 }
 0x145   :  { %535 = vmatprep.subr.bf16.mxu0 %v534_v1 }
 0x148   :  { %537 = vmatpush3.bf16.msra.mxu0 %v534_v1 }
 0x149   :  { %539 = vmatprep.subr.bf16.mxu0 %v538_v4 }
 0x14c   :  { %541 = vmatpush3.bf16.msra.mxu0 %v538_v4 }
 0x14d   :  { %543 = vmatprep.subr.bf16.mxu0 %v542_v7 }
 0x150   :  { %545 = vmatpush3.bf16.msra.mxu0 %v542_v7 }
 0x151   :  { %547 = vmatprep.subr.bf16.mxu0 %v546_v10 }
 0x154   :  { %549 = vmatpush3.bf16.msra.mxu0 %v546_v10 }
 0x155   :  { %551 = vmatprep.subr.bf16.mxu0 %v550_v20 }
 0x158   :  { %553 = vmatpush3.bf16.msra.mxu0 %v550_v20 }
 0x20e   :  { %v411_v12 = vpop.f32.mrb[0].mxu0 }
 0x20f   :  { %v145_v13 = vadd.f32 %v411_v12, %v354_v11  ;;  %v139_v14 = vpop.f32.mrb[1].mxu0 }
 0x210   :  { %v140_v15 = vadd.f32 %v354_v11, %v139_v14 }
 0x211   :  { %v149_v17 = vmax.f32 %v145_v13, 0.0 }
 0x212   :  { %v148_v16 = vmax.f32 %v140_v15, 0.0 }
 0x214   :  { %444 = vmatprep.mubr.f32.mxu1 %v148_v16 }
 0x215   :  { %445 = vmatmul.mubr.f32.vlgmr.msra.gmra.mrb[0].mxu1 %v149_v17 }
 0x2e8   :  { %v446_v22 = vpop.f32.mrb[0].mxu1 }
 0x2e9   :  { %v245_v23 = vadd.f32 %v446_v22, %v357_v21  ;;  %v239_v24 = vpop.f32.mrb[1].mxu1 }
 0x2ea   :  { %v240_v25 = vadd.f32 %v357_v21, %v239_v24 }
 0x2eb   :  { %v249_v27 = vmax.f32 %v245_v23, 0.0 }
 0x2ec   :  { %v248_v26 = vmax.f32 %v240_v25, 0.0 }
 0x2ee   :  { %479 = vmatprep.mubr.f32.mxu0 %v248_v26 }
 0x2ef   :  { %480 = vmatmul.mubr.f32.vlgmr.msra.gmra.mrb[2].mxu0 %v249_v27 }
 0x3c2   :  { %v481_v29 = vpop.f32.mrb[2].mxu0 }
 0x3c3   :  { %v345_v30 = vadd.f32 %v481_v29, %v358_v28  ;;  %v339_v31 = vpop.f32.mrb[3].mxu0 }
 0x3c4   :  { %v340_v32 = vadd.f32 %v358_v28, %v339_v31 }
 0x3c5   :  { %349 = vst [vmem:[%s750_s7 + $0x8] sm:$0xff] %v345_v30 }
 0x3c6   :  { %348 = vst [vmem:[%s750_s7] sm:$0xff] %v340_v32 }

</bundles_post_ra>
